<compile_context>
chip_gen: v5e
topology: v5e:2x2
jax: 0.10.0
libtpu: 0.0.40
codegen_flags: <defaults>
</compile_context>

<pallas_src>
import functools

import jax
import jax.numpy as jnp
from jax import lax
from jax.experimental import pallas as pl
from jax.experimental.pallas import tpu as pltpu


def _pow_int(x, p):
    """x**p via repeated multiplication for small integer p (no EUP exp/log)."""
    if p == 2:
        return x * x
    if isinstance(p, int) and p >= 1:
        r = x
        for _ in range(p - 1):
            r = r * x
        return r
    return jnp.power(x, p)


def _at_loss_kernel(fs_ref, ft_ref, out_ref, *, p, hw, k_s, k_t,
                    inv_cs, inv_ct, eps, chunk_s, chunk_t):
    """Partial attention-transfer loss for a block of B samples.

    fs_ref : (B, C_s//k_s, k_s*HW)  student features (lane-folded).
    ft_ref : (B, C_t//k_t, k_t*HW)  teacher features (lane-folded).
    out_ref: (B, 1, 1)              sum over HW of (at_s - at_t)^2 per sample.
    """

    def channel_sumsq(ref, chunk):
        # Streamed channel reduction: statically-unrolled chunk loop so only
        # ~chunk rows are ever upcast/squared at once (bounds f32 temporaries).
        b, r, l = ref.shape
        acc = jnp.zeros((b, 1, l), jnp.float32)
        start = 0
        while start < r:
            size = min(chunk, r - start)
            x = ref[:, start:start + size, :].astype(jnp.float32)
            acc = acc + jnp.sum(_pow_int(x, p), axis=1, keepdims=True)
            start += size
        return acc                                        # (B, 1, L)

    def fold(a, k):
        # (B, 1, k*HW) -> (B, 1, HW): sum the k channel groups folded into
        # lanes. Tiny intermediate, so the lane slices are effectively free.
        if k == 1:
            return a
        out = a[:, :, 0:hw]
        for j in range(1, k):
            out = out + a[:, :, j * hw:(j + 1) * hw]
        return out

    a_s = fold(channel_sumsq(fs_ref, chunk_s), k_s) * inv_cs      # (B, 1, HW)
    a_t = fold(channel_sumsq(ft_ref, chunk_t), k_t) * inv_ct      # (B, 1, HW)

    # F.normalize(x, dim=1): x / max(||x||_2, eps) == x * rsqrt(max(sum x^2, eps^2))
    inv_ns = lax.rsqrt(jnp.maximum(jnp.sum(a_s * a_s, axis=2, keepdims=True),
                                   eps * eps))
    inv_nt = lax.rsqrt(jnp.maximum(jnp.sum(a_t * a_t, axis=2, keepdims=True),
                                   eps * eps))

    d = a_s * inv_ns - a_t * inv_nt
    out_ref[...] = jnp.sum(d * d, axis=2, keepdims=True)          # (B, 1, 1)


def _fold_factor(C, HW, itemsize):
    """Smallest divisor k of C so a folded row (k*HW elems) fills >=128 lanes
    and >=512 B (DMA burst + vreg occupancy)."""
    target = max(128, 512 // max(1, itemsize))
    if C * HW <= target:
        return C
    for k in range(1, C + 1):
        if C % k == 0 and k * HW >= target:
            return k
    return C


def _chunk_rows(B, R, L, max_bytes=2 << 20):
    """Row-chunk size so the f32 chunk temporary stays under ~max_bytes."""
    max_rows = max(1, max_bytes // (4 * max(1, B * L)))
    if max_rows >= R:
        return R
    return max(8, (max_rows // 8) * 8)


def attention_loss_pallas(f_s, f_t, *, p=2, loss_weight=1.0, eps=1e-12):
    """Attention-transfer KD loss. f_s: (N,C_s,H,W), f_t: (N,C_t,H,W)."""
    N, C_s, H, W = f_s.shape
    Nt, C_t, Ht, Wt = f_t.shape
    assert (N, H, W) == (Nt, Ht, Wt), "student/teacher must share batch & spatial dims"
    HW = H * W

    it_s = jnp.dtype(f_s.dtype).itemsize
    it_t = jnp.dtype(f_t.dtype).itemsize

    # Lane-density fold (pure metadata reshape: channels are row-major over HW).
    k_s = _fold_factor(C_s, HW, it_s)
    k_t = _fold_factor(C_t, HW, it_t)
    Rs, Ls = C_s // k_s, k_s * HW
    Rt, Lt = C_t // k_t, k_t * HW
    fs3 = f_s.reshape(N, Rs, Ls)
    ft3 = f_t.reshape(N, Rt, Lt)

    # Per-generation VMEM budget: ~75% of physical VMEM (compiler headroom).
    try:
        vmem_cap = int(pltpu.get_tpu_info().vmem_capacity_bytes)
    except Exception:
        vmem_cap = 64 << 20          # conservative fallback, valid on all gens
    vmem_budget = (vmem_cap * 3) // 4

    # Batch block B: stream >= ~4 MiB per grid step, keep the double-buffered
    # input tiles (plus streamed-chunk temporaries) inside the VMEM budget.
    bytes_per_sample = HW * (C_s * it_s + C_t * it_t)
    overhead = 8 << 20               # f32 chunk temps, accumulators, margin
    target_stream = 4 << 20
    B = 1
    for cand in range(1, N + 1):
        if N % cand:
            continue
        if 2 * cand * bytes_per_sample + overhead > vmem_budget:
            break
        B = cand
        if cand * bytes_per_sample >= target_stream:
            break
    # TODO(synk): if even B=1 exceeds the budget (huge C*HW per sample), add a
    # channel-tile grid axis with a resident (1,HW) accumulator.

    chunk_s = _chunk_rows(B, Rs, Ls)
    chunk_t = _chunk_rows(B, Rt, Lt)

    kernel = functools.partial(
        _at_loss_kernel, p=p, hw=HW, k_s=k_s, k_t=k_t,
        inv_cs=1.0 / C_s, inv_ct=1.0 / C_t, eps=float(eps),
        chunk_s=chunk_s, chunk_t=chunk_t)

    partials = pl.pallas_call(
        kernel,
        out_shape=jax.ShapeDtypeStruct((N, 1, 1), jnp.float32),
        grid_spec=pltpu.PrefetchScalarGridSpec(
            num_scalar_prefetch=0,
            grid=(N // B,),
            in_specs=[
                pl.BlockSpec((B, Rs, Ls), lambda n: (n, 0, 0)),   # student
                pl.BlockSpec((B, Rt, Lt), lambda n: (n, 0, 0)),   # teacher
            ],
            out_specs=pl.BlockSpec((B, 1, 1), lambda n: (n, 0, 0)),
        ),
        compiler_params=pltpu.CompilerParams(
            dimension_semantics=("parallel",),
            vmem_limit_bytes=int(vmem_budget)),
    )(fs3, ft3)

    # torch: (at_s - at_t).pow(2).mean() over all N*HW elements.
    total = jnp.sum(partials)
    return (total / jnp.float32(N * HW)) * jnp.float32(loss_weight)


def attention_loss_ref(f_s, f_t, *, p=2, loss_weight=1.0, eps=1e-12):
    """Pure-JAX reference matching the PyTorch forward."""
    N = f_s.shape[0]

    def at(f):
        a = jnp.mean(f.astype(jnp.float32) ** p, axis=1).reshape(N, -1)
        n = jnp.sqrt(jnp.sum(a * a, axis=1, keepdims=True))
        return a / jnp.maximum(n, eps)

    d = at(f_s) - at(f_t)
    return jnp.mean(d * d) * loss_weight


if __name__ == "__main__":
    import numpy as np

    base_key = jax.random.PRNGKey(0)

    def check(case_idx, N, C_s, C_t, H, W, p=2, loss_weight=1.0):
        key = jax.random.fold_in(base_key, case_idx)
        ks, kt = jax.random.split(key)
        f_s = jax.random.normal(ks, (N, C_s, H, W), dtype=jnp.float32)
        f_t = jax.random.normal(kt, (N, C_t, H, W), dtype=jnp.float32)
        fn = jax.jit(functools.partial(attention_loss_pallas,
                                       p=p, loss_weight=loss_weight))
        out = jax.block_until_ready(fn(f_s, f_t))
        ref = attention_loss_ref(f_s, f_t, p=p, loss_weight=loss_weight)
        assert np.allclose(np.asarray(out), np.asarray(ref),
                           rtol=1e-5, atol=1e-6), (out, ref)

    # Main case: batch=2, differing student/teacher channels, 16x16 maps.
    check(0, 2, 4, 8, 16, 16)
    # Small-spatial case: exercises the lane-density fold (HW=49 < 128 lanes)
    # and batch blocking.
    check(1, 2, 8, 16, 7, 7)

    print("KERNEL_OK")
</pallas_src>

<mosaic_0001>
module attributes {stable_mosaic.version = 11 : i64} {
  func.func @_at_loss_kernel(%arg0: i32, %arg1: memref<2x4x256xf32, #tpu.memory_space<vmem>>, %arg2: memref<2x8x256xf32, #tpu.memory_space<vmem>>, %arg3: memref<2x1x1xf32, #tpu.memory_space<vmem>>) attributes {dimension_semantics = [#tpu.dimension_semantics<parallel>], iteration_bounds = array<i64: 1>, scalar_prefetch = 0 : i64, scratch_operands = 0 : i64, tpu.core_type = #tpu.core_type<tc>, window_params = [{transform_indices = @transform_0, window_bounds = array<i64: 2, 4, 256>}, {transform_indices = @transform_1, window_bounds = array<i64: 2, 8, 256>}, {transform_indices = @transform_2, window_bounds = array<i64: 2, 1, 1>}]} {
    %cst = arith.constant 0.000000e+00 : f32
    %0 = vector.broadcast %cst : f32 to vector<2x1x256xf32>
    %c0 = arith.constant 0 : index
    %c0_0 = arith.constant 0 : index
    %c0_1 = arith.constant 0 : index
    %1 = vector.load %arg1[%c0, %c0_0, %c0_1] : memref<2x4x256xf32, #tpu.memory_space<vmem>>, vector<2x4x256xf32>
    %2 = arith.mulf %1, %1 : vector<2x4x256xf32>
    %cst_2 = arith.constant dense<0.000000e+00> : vector<2x256xf32>
    %3 = vector.multi_reduction <add>, %2, %cst_2 [1] : vector<2x4x256xf32> to vector<2x256xf32>
    %4 = vector.shape_cast %3 : vector<2x256xf32> to vector<2x1x256xf32>
    %5 = arith.addf %0, %4 : vector<2x1x256xf32>
    %cst_3 = arith.constant 2.500000e-01 : f32
    %6 = vector.broadcast %cst_3 : f32 to vector<2x1x256xf32>
    %7 = arith.mulf %5, %6 : vector<2x1x256xf32>
    %cst_4 = arith.constant 0.000000e+00 : f32
    %8 = vector.broadcast %cst_4 : f32 to vector<2x1x256xf32>
    %c0_5 = arith.constant 0 : index
    %c0_6 = arith.constant 0 : index
    %c0_7 = arith.constant 0 : index
    %9 = vector.load %arg2[%c0_5, %c0_6, %c0_7] : memref<2x8x256xf32, #tpu.memory_space<vmem>>, vector<2x8x256xf32>
    %10 = arith.mulf %9, %9 : vector<2x8x256xf32>
    %cst_8 = arith.constant dense<0.000000e+00> : vector<2x256xf32>
    %11 = vector.multi_reduction <add>, %10, %cst_8 [1] : vector<2x8x256xf32> to vector<2x256xf32>
    %12 = vector.shape_cast %11 : vector<2x256xf32> to vector<2x1x256xf32>
    %13 = arith.addf %8, %12 : vector<2x1x256xf32>
    %cst_9 = arith.constant 1.250000e-01 : f32
    %14 = vector.broadcast %cst_9 : f32 to vector<2x1x256xf32>
    %15 = arith.mulf %13, %14 : vector<2x1x256xf32>
    %16 = arith.mulf %7, %7 : vector<2x1x256xf32>
    %cst_10 = arith.constant dense<0.000000e+00> : vector<2x1xf32>
    %17 = vector.multi_reduction <add>, %16, %cst_10 [2] : vector<2x1x256xf32> to vector<2x1xf32>
    %18 = vector.shape_cast %17 : vector<2x1xf32> to vector<2x1x1xf32>
    %cst_11 = arith.constant 1.000000e-24 : f32
    %19 = vector.broadcast %cst_11 : f32 to vector<2x1x1xf32>
    %20 = arith.maximumf %18, %19 : vector<2x1x1xf32>
    %21 = math.rsqrt %20 : vector<2x1x1xf32>
    %22 = arith.mulf %15, %15 : vector<2x1x256xf32>
    %cst_12 = arith.constant dense<0.000000e+00> : vector<2x1xf32>
    %23 = vector.multi_reduction <add>, %22, %cst_12 [2] : vector<2x1x256xf32> to vector<2x1xf32>
    %24 = vector.shape_cast %23 : vector<2x1xf32> to vector<2x1x1xf32>
    %cst_13 = arith.constant 1.000000e-24 : f32
    %25 = vector.broadcast %cst_13 : f32 to vector<2x1x1xf32>
    %26 = arith.maximumf %24, %25 : vector<2x1x1xf32>
    %27 = math.rsqrt %26 : vector<2x1x1xf32>
    %28 = vector.broadcast %21 : vector<2x1x1xf32> to vector<2x1x256xf32>
    %29 = arith.mulf %7, %28 : vector<2x1x256xf32>
    %30 = vector.broadcast %27 : vector<2x1x1xf32> to vector<2x1x256xf32>
    %31 = arith.mulf %15, %30 : vector<2x1x256xf32>
    %32 = arith.subf %29, %31 : vector<2x1x256xf32>
    %33 = arith.mulf %32, %32 : vector<2x1x256xf32>
    %cst_14 = arith.constant dense<0.000000e+00> : vector<2x1xf32>
    %34 = vector.multi_reduction <add>, %33, %cst_14 [2] : vector<2x1x256xf32> to vector<2x1xf32>
    %35 = vector.shape_cast %34 : vector<2x1xf32> to vector<2x1x1xf32>
    %c0_15 = arith.constant 0 : index
    %c0_16 = arith.constant 0 : index
    %c0_17 = arith.constant 0 : index
    %36 = vector.load %arg3[%c0_15, %c0_16, %c0_17] : memref<2x1x1xf32, #tpu.memory_space<vmem>>, vector<2x1x1xf32>
    tpu.vector_store %arg3[%c0_15, %c0_16, %c0_17], %35 {strides = array<i32>} : memref<2x1x1xf32, #tpu.memory_space<vmem>>, vector<2x1x1xf32>,
    return
  }
  func.func @transform_0(%arg0: i32) -> (i32, i32, i32) {
    %c0_i32 = arith.constant 0 : i32
    %c0_i32_0 = arith.constant 0 : i32
    %c0_i32_1 = arith.constant 0 : i32
    return %arg0, %c0_i32, %c0_i32_0 : i32, i32, i32
  }
  func.func @transform_1(%arg0: i32) -> (i32, i32, i32) {
    %c0_i32 = arith.constant 0 : i32
    %c0_i32_0 = arith.constant 0 : i32
    %c0_i32_1 = arith.constant 0 : i32
    return %arg0, %c0_i32, %c0_i32_0 : i32, i32, i32
  }
  func.func @transform_2(%arg0: i32) -> (i32, i32, i32) {
    %c0_i32 = arith.constant 0 : i32
    %c0_i32_0 = arith.constant 0 : i32
    %c0_i32_1 = arith.constant 0 : i32
    return %arg0, %c0_i32, %c0_i32_0 : i32, i32, i32
  }
}

</mosaic_0001>

<bundles_post_ra>
// kernel: attention_loss_pallas.1
= control target key start
LH: loop header
LB: loop body
LE: loop exit
PB: predicated region body
PF: predicated region fallthrough
CT: control target
= control target key end

     0   :  { %vm28_vm0 = vcmask 1043456   ;;  %vm191_vm13 = vcmask 0   ;;  %s279_s1 = inlined_call_operand.vmem [shape: f32[2,8,256], index: 1, kind: input, shape index: {}]   ;;  %s280_s0 = inlined_call_operand.vmem [shape: f32[2,4,256], index: 0, kind: input, shape index: {}]   ;;  %s281_s2 = inlined_call_operand.vmem [shape: f32[2,1,1], index: 2, kind: output, shape index: {}]  }
   0x1   :  { %v65_v0 = vld [vmem:[%s279_s1] sm:$0xff]  ;;  %v66_v1 = vld [vmem:[%s279_s1 + $0x8] sm:$0xff]  ;;  %v67_v2 = vld [vmem:[%s279_s1 + $0x10] sm:$0xff] }
   0x2   :  { %v69_v3 = vmul.f32 %v65_v0, %v65_v0  ;;  %v70_v4 = vmul.f32 %v66_v1, %v66_v1  ;;  %v68_v5 = vld [vmem:[%s279_s1 + $0x18] sm:$0xff]  ;;  %v71_v6 = vmul.f32 %v67_v2, %v67_v2  ;;  %v11_v7 = vld [vmem:[%s280_s0] sm:$0xff]  ;;  %v12_v8 = vld [vmem:[%s280_s0 + $0x8] sm:$0xff] }
   0x3   :  { %v72_v9 = vmul.f32 %v68_v5, %v68_v5  ;;  %v13_v10 = vmul.f32 %v11_v7, %v11_v7  ;;  %v14_v11 = vmul.f32 %v12_v8, %v12_v8 }
   0x4   :  { %v73_v12 = vrot.slane %v69_v3, 4  ;;  %v79_v13 = vrot.slane %v70_v4, 4  ;;  %v85_v14 = vrot.slane %v71_v6, 4 }
   0x5   :  { %v91_v15 = vrot.slane %v72_v9, 4  ;;  %17 = vst [vmem:[#allocation1] ss:$2 sm:$0xff] %v13_v10 }
   0x6   :  { %v74_v16 = vadd.f32 %v73_v12, %v69_v3  ;;  %v80_v17 = vadd.f32 %v79_v13, %v70_v4  ;;  %v86_v18 = vadd.f32 %v85_v14, %v71_v6  ;;  %21 = vst [vmem:[#allocation1 + $0x10] ss:$2 sm:$0xff] %v14_v11 }
   0x7   :  { %v92_v19 = vadd.f32 %v91_v15, %v72_v9 }
   0x8   :  { %v75_v20 = vrot.slane %v74_v16, 2  ;;  %v81_v21 = vrot.slane %v80_v17, 2  ;;  %v87_v22 = vrot.slane %v86_v18, 2 }
   0x9   :  { %v93_v23 = vrot.slane %v92_v19, 2 }
   0xa   :  { %v76_v24 = vadd.f32 %v75_v20, %v74_v16  ;;  %v82_v25 = vadd.f32 %v81_v21, %v80_v17  ;;  %v88_v26 = vadd.f32 %v87_v22, %v86_v18 }
   0xb   :  { %v94_v27 = vadd.f32 %v93_v23, %v92_v19 }
   0xc   :  { %v77_v28 = vrot.slane %v76_v24, 1  ;;  %v83_v29 = vrot.slane %v82_v25, 1  ;;  %v89_v30 = vrot.slane %v88_v26, 1  ;;  %v18_v31 = vld.sshfl [vmem:[#allocation1] sm:$0xff pattern:$0x75316420] }
   0xd   :  { %v95_v32 = vrot.slane %v94_v27, 1  ;;  %v19_v33 = vld.sshfl [vmem:[#allocation1 + $0x8] sm:$0xff pattern:$0x75316420]  ;;  %v29_v34 = vsel %vm28_vm0, %v18_v31, 0.0 }
   0xe   :  { %v78_v35 = vadd.f32 %v77_v28, %v76_v24  ;;  %v84_v36 = vadd.f32 %v83_v29, %v82_v25  ;;  %v90_v37 = vadd.f32 %v89_v30, %v88_v26  ;;  %v30_v38 = vrot.slane %v29_v34, 4  ;;  %v22_v39 = vld.sshfl [vmem:[#allocation1 + $0x10] sm:$0xff pattern:$0x75316420] }
   0xf   :  { %v96_v40 = vadd.f32 %v95_v32, %v94_v27  ;;  %v36_v41 = vsel %vm28_vm0, %v19_v33, 0.0  ;;  %v23_v42 = vld.sshfl [vmem:[#allocation1 + $0x18] sm:$0xff pattern:$0x75316420]  ;;  %v43_v43 = vsel %vm28_vm0, %v22_v39, 0.0 }
  0x10   :  { %v242_v44 = vmul.f32 0.125, %v78_v35  ;;  %v244_v45 = vmul.f32 0.125, %v84_v36  ;;  %v31_v46 = vadd.f32 %v30_v38, %v29_v34  ;;  %v246_v47 = vmul.f32 0.125, %v90_v37 }
  0x11   :  { %v37_v48 = vrot.slane %v36_v41, 4  ;;  %v44_v49 = vrot.slane %v43_v43, 4  ;;  %v50_v50 = vsel %vm28_vm0, %v23_v42, 0.0  ;;  %v253_v53 = vmul.f32 0.125, %v96_v40 }
  0x12   :  { %v137_v51 = vmul.f32 %v242_v44, %v242_v44  ;;  %v138_v52 = vmul.f32 %v244_v45, %v244_v45  ;;  %v32_v54 = vrot.slane %v31_v46, 2  ;;  %v51_v57 = vrot.slane %v50_v50, 4 }
  0x13   :  { %v38_v55 = vadd.f32 %v37_v48, %v36_v41  ;;  %v45_v56 = vadd.f32 %v44_v49, %v43_v43  ;;  %v139_v63 = vmul.f32 %v246_v47, %v246_v47  ;;  %v140_v0 = vmul.f32 %v253_v53, %v253_v53 }
  0x14   :  { %v141_v58 = vadd.f32 %v138_v52, %v137_v51  ;;  %v33_v59 = vadd.f32 %v32_v54, %v31_v46  ;;  %v52_v62 = vadd.f32 %v51_v57, %v50_v50 }
  0x15   :  { %v39_v60 = vrot.slane %v38_v55, 2  ;;  %v46_v61 = vrot.slane %v45_v56, 2  ;;  %v144_v9 = vadd.f32 %v140_v0, %v139_v63 }
  0x16   :  { %142 = vadd.xlane.f32.xlu1 %v141_v58  ;;  %v34_v1 = vrot.slane %v33_v59, 1  ;;  %v53_v4 = vrot.slane %v52_v62, 2 }
  0x17   :  { %v40_v2 = vadd.f32 %v39_v60, %v38_v55  ;;  %v47_v3 = vadd.f32 %v46_v61, %v45_v56 }
  0x18   :  { %v35_v5 = vadd.f32 %v34_v1, %v33_v59  ;;  %v54_v8 = vadd.f32 %v53_v4, %v52_v62 }
  0x19   :  { %v41_v6 = vrot.slane %v40_v2, 1  ;;  %v48_v7 = vrot.slane %v47_v3, 1 }
  0x1a   :  { %v61_v10 = vmul.f32 0.25, %v35_v5  ;;  %v55_v13 = vrot.slane %v54_v8, 1 }
  0x1b   :  { %v42_v11 = vadd.f32 %v41_v6, %v40_v2  ;;  %v49_v12 = vadd.f32 %v48_v7, %v47_v3 }
  0x1c   :  { %v105_v15 = vmul.f32 %v61_v10, %v61_v10  ;;  %v56_v16 = vadd.f32 %v55_v13, %v54_v8 }
  0x1d   :  { %v62_v14 = vmul.f32 0.25, %v42_v11  ;;  %v259_v18 = vmul.f32 0.25, %v49_v12 }
  0x1e   :  { %145 = vadd.xlane.f32.xlu1 %v144_v9  ;;  %v261_v19 = vmul.f32 0.25, %v56_v16 }
  0x1f   :  { %v106_v17 = vmul.f32 %v62_v14, %v62_v14  ;;  %v107_v21 = vmul.f32 %v259_v18, %v259_v18 }
  0x20   :  { %v108_v22 = vmul.f32 %v261_v19, %v261_v19 }
  0x21   :  { %v109_v20 = vadd.f32 %v106_v17, %v105_v15 }
  0x22   :  { %v112_v23 = vadd.f32 %v108_v22, %v107_v21 }
  0x23   :  { %110 = vadd.xlane.f32.xlu0 %v109_v20 }
  0x2b   :  { %113 = vadd.xlane.f32.xlu0 %v112_v23 }
  0x89   :  { %v143_v24 = vpop.xlane.xlu1 %142 }
  0x8a   :  { %v147_v25 = vmax.f32 %v143_v24, 1e-24 }
  0x8c   :  { %198 = vrsqrt.f32 %v147_v25  ;;  %vm155_vm1 = vweird.f32 %v147_v25 }
  0x91   :  { %v146_v26 = vpop.xlane.xlu1 %145 }
  0x92   :  { %v199_v27 = vpop.eup %198  ;;  %v148_v28 = vmax.f32 %v146_v26, 1e-24 }
  0x93   :  { %v150_v29 = vmul.f32 %v199_v27, %v147_v25  ;;  %vm156_vm2 = vweird.f32 %v199_v27 }
  0x94   :  { %200 = vrsqrt.f32 %v148_v28  ;;  %vm157_vm4 = vmor %vm155_vm1, %vm156_vm2  ;;  %vm165_vm7 = vweird.f32 %v148_v28 }
  0x95   :  { %v151_v32 = vmul.f32 %v199_v27, %v150_v29 }
  0x96   :  { %v111_v30 = vpop.xlane.xlu0 %110 }
  0x97   :  { %v115_v31 = vmax.f32 %v111_v30, 1e-24  ;;  %v152_v34 = vmul.f32 0.5, %v151_v32 }
  0x99   :  { %202 = vrsqrt.f32 %v115_v31  ;;  %v153_v39 = vsub.f32 1.5, %v152_v34  ;;  %vm123_vm5 = vweird.f32 %v115_v31 }
  0x9a   :  { %v201_v33 = vpop.eup %200 }
  0x9b   :  { %v160_v35 = vmul.f32 %v201_v33, %v148_v28  ;;  %v154_v48 = vmul.f32 %v199_v27, %v153_v39  ;;  %vm166_vm8 = vweird.f32 %v201_v33 }
  0x9c   :  { %vm167_vm10 = vmor %vm165_vm7, %vm166_vm8 }
  0x9d   :  { %v161_v40 = vmul.f32 %v201_v33, %v160_v35  ;;  %v158_v55 = vsel %vm157_vm4, %v199_v27, %v154_v48 }
  0x9e   :  { %v114_v36 = vpop.xlane.xlu0 %113  ;;  %v173_v60 = vmul.f32 %v158_v55, %v242_v44  ;;  %v174_v61 = vmul.f32 %v158_v55, %v244_v45 }
  0x9f   :  { %v203_v37 = vpop.eup %202  ;;  %v116_v38 = vmax.f32 %v114_v36, 1e-24  ;;  %v162_v43 = vmul.f32 0.5, %v161_v40 }
  0xa0   :  { %v118_v41 = vmul.f32 %v203_v37, %v115_v31  ;;  %vm124_vm3 = vweird.f32 %v203_v37 }
  0xa1   :  { %204 = vrsqrt.f32 %v116_v38  ;;  %v163_v51 = vsub.f32 1.5, %v162_v43  ;;  %vm125_vm6 = vmor %vm123_vm5, %vm124_vm3  ;;  %vm133_vm11 = vweird.f32 %v116_v38 }
  0xa2   :  { %v119_v42 = vmul.f32 %v203_v37, %v118_v41 }
  0xa3   :  { %v164_v62 = vmul.f32 %v201_v33, %v163_v51 }
  0xa4   :  { %v120_v46 = vmul.f32 0.5, %v119_v42 }
  0xa5   :  { %v168_v6 = vsel %vm167_vm10, %v201_v33, %v164_v62 }
  0xa6   :  { %v121_v49 = vsub.f32 1.5, %v120_v46  ;;  %v175_v9 = vmul.f32 %v168_v6, %v246_v47 }
  0xa7   :  { %v205_v50 = vpop.eup %204 }
  0xa8   :  { %v128_v52 = vmul.f32 %v205_v50, %v116_v38  ;;  %v122_v54 = vmul.f32 %v203_v37, %v121_v49  ;;  %vm134_vm9 = vweird.f32 %v205_v50 }
  0xa9   :  { %vm135_vm12 = vmor %vm133_vm11, %vm134_vm9 }
  0xaa   :  { %v129_v56 = vmul.f32 %v205_v50, %v128_v52  ;;  %v126_v57 = vsel %vm125_vm6, %v203_v37, %v122_v54 }
  0xab   :  { %v169_v58 = vmul.f32 %v126_v57, %v61_v10  ;;  %v170_v59 = vmul.f32 %v126_v57, %v62_v14  ;;  %v176_v10 = vmul.f32 %v168_v6, %v253_v53 }
  0xac   :  { %v130_v63 = vmul.f32 0.5, %v129_v56 }
  0xad   :  { %v177_v0 = vsub.f32 %v169_v58, %v173_v60  ;;  %v178_v1 = vsub.f32 %v170_v59, %v174_v61 }
  0xae   :  { %v131_v2 = vsub.f32 1.5, %v130_v63 }
  0xaf   :  { %v181_v3 = vmul.f32 %v177_v0, %v177_v0  ;;  %v182_v4 = vmul.f32 %v178_v1, %v178_v1 }
  0xb0   :  { %v132_v5 = vmul.f32 %v205_v50, %v131_v2 }
  0xb1   :  { %v185_v7 = vadd.f32 %v182_v4, %v181_v3 }
  0xb2   :  { %v136_v8 = vsel %vm135_vm12, %v205_v50, %v132_v5 }
  0xb3   :  { %186 = vadd.xlane.f32.xlu2 %v185_v7  ;;  %v171_v44 = vmul.f32 %v136_v8, %v259_v18  ;;  %v172_v45 = vmul.f32 %v136_v8, %v261_v19 }
  0xb5   :  { %v179_v11 = vsub.f32 %v171_v44, %v175_v9  ;;  %v180_v12 = vsub.f32 %v172_v45, %v176_v10 }
  0xb7   :  { %v183_v13 = vmul.f32 %v179_v11, %v179_v11  ;;  %v184_v14 = vmul.f32 %v180_v12, %v180_v12 }
  0xb9   :  { %v188_v15 = vadd.f32 %v184_v14, %v183_v13 }
  0xbb   :  { %189 = vadd.xlane.f32.xlu2 %v188_v15 }
 0x126   :  { %v187_v16 = vpop.xlane.xlu2 %186 }
 0x127   :  { %192 = vst.msk [vmem:[%s281_s2] sm:$0x1] %vm191_vm13, %v187_v16 }
 0x12e   :  { %v190_v17 = vpop.xlane.xlu2 %189 }
 0x12f   :  { %193 = vst.msk [vmem:[%s281_s2 + $0x1] sm:$0x1] %vm191_vm13, %v190_v17 }

</bundles_post_ra>
